<compile_context>
chip_gen: v6e
topology: v6e:2x2x1
jax: 0.10.0
libtpu: 0.0.40
codegen_flags: <defaults>
</compile_context>

<pallas_src>
import functools

import jax
import jax.numpy as jnp
from jax.experimental import pallas as pl
from jax.experimental.pallas import tpu as pltpu


def _round_up(x, m):
    return ((x + m - 1) // m) * m


def _sublane_multiple(dtype):
    itemsize = jnp.dtype(dtype).itemsize
    if itemsize >= 4:
        return 8
    if itemsize == 2:
        return 16
    return 32


def _fc_kernel(x_ref, w1s_ref, b1s_ref, w2_ref, b2_ref, w3_ref, b3_ref, o_ref,
               *, d_out_p):
    cdt = w2_ref.dtype                      # operand/compute dtype (bf16 or f32)

    # Layer 1 and the skip Linear share the same LHS -> one wide-N MXU matmul.
    z = jnp.dot(x_ref[...], w1s_ref[...],
                preferred_element_type=jnp.float32) + b1s_ref[...]
    h = jnp.maximum(z[:, :d_out_p], 0.0)    # ReLU(L1(x)); lane-tile-aligned slice
    skip = z[:, d_out_p:]                   # linear(x), width d_out, no ReLU

    h = jnp.dot(h.astype(cdt), w2_ref[...],
                preferred_element_type=jnp.float32) + b2_ref[...]
    h = jnp.maximum(h, 0.0)
    h = jnp.dot(h.astype(cdt), w3_ref[...],
                preferred_element_type=jnp.float32) + b3_ref[...]
    h = jnp.maximum(h, 0.0)                 # (tm, d_out)

    o_ref[...] = (h + skip).astype(o_ref.dtype)


def pack_params(params, compute_dtype=jnp.bfloat16):
    """Fuse [w1 | w_skip]; pad only the *hidden* dims to 128 lanes; cast.

    Output shapes (d_out_p = round_up(d_out, 128)):
      w1s: (d_in, d_out_p + d_out)   b1s: (1, d_out_p + d_out)
      w2 : (d_out_p, d_out_p)        b2 : (1, d_out_p)
      w3 : (d_out_p, d_out)          b3 : (1, d_out)
    The contraction dim d_in and the final output dim d_out stay unpadded.
    Padded rows/cols are zero, so results are unchanged (zeros through ReLU
    and the zero weight rows of the next layer).
    """
    w1, b1 = params["w1"], params["b1"]
    w2, b2 = params["w2"], params["b2"]
    w3, b3 = params["w3"], params["b3"]
    ws, bs = params["ws"], params["bs"]
    d_in, d_out = w1.shape
    d_out_p = _round_up(d_out, 128)
    cdt = compute_dtype if compute_dtype is not None else w1.dtype

    pad_cols = lambda a, c: jnp.pad(a, ((0, 0), (0, c - a.shape[1])))
    pad_rows = lambda a, r: jnp.pad(a, ((0, r - a.shape[0]), (0, 0)))

    w1p = pad_cols(w1, d_out_p)                     # (d_in, d_out_p)
    b1p = pad_cols(b1, d_out_p)                     # (1, d_out_p)
    return {
        "w1s": jnp.concatenate([w1p, ws], axis=1).astype(cdt),
        "b1s": jnp.concatenate([b1p, bs], axis=1).astype(jnp.float32),
        "w2": pad_cols(pad_rows(w2, d_out_p), d_out_p).astype(cdt),
        "b2": pad_cols(b2, d_out_p).astype(jnp.float32),
        "w3": pad_rows(w3, d_out_p).astype(cdt),    # (d_out_p, d_out)
        "b3": b3.astype(jnp.float32),
    }


@functools.partial(jax.jit, static_argnames=("tile_m",))
def fc_forward(x, packed, tile_m=2048):
    """Fused FC forward. x: (N, D_in). packed: output of pack_params()."""
    n, d_in = x.shape
    d_out_p, d_out = packed["w3"].shape
    cdt = packed["w1s"].dtype
    out_dtype = x.dtype
    in_isz = jnp.dtype(cdt).itemsize
    out_isz = jnp.dtype(out_dtype).itemsize

    x_c = x if x.dtype == cdt else x.astype(cdt)

    # --- M tile choice -------------------------------------------------------
    # Big tiles amortize the ~0.35us per-grid-step overhead; aim for >=2 grid
    # steps so megacore (v7x) can shard the "parallel" axis across both TCs.
    sub = _sublane_multiple(cdt)
    tm = min(tile_m, _round_up(max(-(-n // 2), 1), sub))
    tm = max(tm, sub)
    # Cap tm by a VMEM row-budget (double-buffered x/out tiles + f32 temps),
    # leaving room for the (double-buffered) resident weights — safe on v7x.
    w_bytes = sum(int(v.size) * jnp.dtype(v.dtype).itemsize
                  for v in packed.values())
    per_row = 2 * (d_in * in_isz + d_out * out_isz) + 3 * (d_out_p + d_out) * 4
    budget = (48 << 20) - 2 * w_bytes
    if budget > per_row * sub:
        tm = min(tm, max(sub, (budget // per_row) // sub * sub))
    grid = (pl.cdiv(n, tm),)

    # --- compiler hints ------------------------------------------------------
    flops = 2 * n * (d_in * (d_out_p + d_out) + d_out_p * d_out_p
                     + d_out_p * d_out)
    bytes_accessed = w_bytes + n * d_in * in_isz + n * d_out * out_isz
    cost = pl.CostEstimate(flops=flops, transcendentals=0,
                           bytes_accessed=bytes_accessed)
    footprint = (2 * w_bytes                                   # dbl-buffered weights
                 + 2 * tm * (d_in * in_isz + d_out * out_isz)  # x/out tiles
                 + 3 * tm * (d_out_p + d_out) * 4)             # f32 temporaries
    vmem_limit = int(min(max(footprint + (4 << 20), 16 << 20), 56 << 20))

    const = lambda shape: pl.BlockSpec(shape, lambda i: (0,) * len(shape))

    out = pl.pallas_call(
        functools.partial(_fc_kernel, d_out_p=d_out_p),
        out_shape=jax.ShapeDtypeStruct((n, d_out), out_dtype),
        grid_spec=pltpu.PrefetchScalarGridSpec(
            num_scalar_prefetch=0,
            grid=grid,
            in_specs=[
                pl.BlockSpec((tm, d_in), lambda i: (i, 0)),   # x row tile, no pad
                const((d_in, d_out_p + d_out)),               # [w1 | w_skip]
                const((1, d_out_p + d_out)),                  # [b1 | b_skip]
                const((d_out_p, d_out_p)),                    # w2
                const((1, d_out_p)),                          # b2
                const((d_out_p, d_out)),                      # w3
                const((1, d_out)),                            # b3
            ],
            out_specs=pl.BlockSpec((tm, d_out), lambda i: (i, 0)),
        ),
        compiler_params=pltpu.CompilerParams(
            dimension_semantics=("parallel",),
            vmem_limit_bytes=vmem_limit),
        cost_estimate=cost,
    )(x_c, packed["w1s"], packed["b1s"], packed["w2"], packed["b2"],
      packed["w3"], packed["b3"])
    return out


def init_params(key, input_dim, output_dim, dtype=jnp.float32):
    """Deterministic init mimicking nn.Linear's U(-1/sqrt(fan_in), 1/sqrt(fan_in))."""
    keys = jax.random.split(key, 8)

    def lin(kw, kb, fan_in, fan_out):
        bound = 1.0 / jnp.sqrt(jnp.asarray(fan_in, dtype))
        w = jax.random.uniform(kw, (fan_in, fan_out), dtype, -bound, bound)
        b = jax.random.uniform(kb, (1, fan_out), dtype, -bound, bound)
        return w, b

    w1, b1 = lin(keys[0], keys[1], input_dim, output_dim)
    w2, b2 = lin(keys[2], keys[3], output_dim, output_dim)
    w3, b3 = lin(keys[4], keys[5], output_dim, output_dim)
    ws, bs = lin(keys[6], keys[7], input_dim, output_dim)
    return {"w1": w1, "b1": b1, "w2": w2, "b2": b2,
            "w3": w3, "b3": b3, "ws": ws, "bs": bs}


def fc_reference(x, p):
    relu = lambda v: jnp.maximum(v, 0.0)
    h = relu(x @ p["w1"] + p["b1"])
    h = relu(h @ p["w2"] + p["b2"])
    h = relu(h @ p["w3"] + p["b3"])
    return h + (x @ p["ws"] + p["bs"])


if __name__ == "__main__":
    key = jax.random.PRNGKey(0)
    kx, kp = jax.random.split(key)

    batch, input_dim, output_dim = 256, 32, 64
    x = jax.random.normal(kx, (batch, input_dim), dtype=jnp.float32)
    params = init_params(kp, input_dim, output_dim)
    ref = fc_reference(x, params)

    # Default path: bf16 operands, f32 accumulation (grid of 2 x 128-row tiles).
    packed_bf16 = pack_params(params)
    out_bf16 = jax.block_until_ready(fc_forward(x, packed_bf16))
    assert out_bf16.shape == (batch, output_dim)
    assert jnp.allclose(out_bf16, ref, atol=5e-2, rtol=5e-2)

    # f32 path: exact vs the pure-JAX reference.
    packed_f32 = pack_params(params, compute_dtype=jnp.float32)
    out_f32 = jax.block_until_ready(fc_forward(x, packed_f32))
    assert out_f32.shape == (batch, output_dim)
    assert jnp.allclose(out_f32, ref, atol=1e-4, rtol=1e-4)

    # Ragged (non-tile-multiple) batch on the bf16 path.
    xb = x[:77]
    out_r = jax.block_until_ready(fc_forward(xb, packed_bf16))
    assert out_r.shape == (77, output_dim)
    assert jnp.allclose(out_r, fc_reference(xb, params), atol=5e-2, rtol=5e-2)

    print("KERNEL_OK")
</pallas_src>

<mosaic_0001>
module attributes {stable_mosaic.version = 11 : i64} {
  func.func @_fc_kernel(%arg0: i32, %arg1: memref<128x32xbf16, #tpu.memory_space<vmem>>, %arg2: memref<32x192xbf16, #tpu.memory_space<vmem>>, %arg3: memref<1x192xf32, #tpu.memory_space<vmem>>, %arg4: memref<128x128xbf16, #tpu.memory_space<vmem>>, %arg5: memref<1x128xf32, #tpu.memory_space<vmem>>, %arg6: memref<128x64xbf16, #tpu.memory_space<vmem>>, %arg7: memref<1x64xf32, #tpu.memory_space<vmem>>, %arg8: memref<128x64xf32, #tpu.memory_space<vmem>>) attributes {dimension_semantics = [#tpu.dimension_semantics<parallel>], iteration_bounds = array<i64: 2>, scalar_prefetch = 0 : i64, scratch_operands = 0 : i64, tpu.core_type = #tpu.core_type<tc>, window_params = [{transform_indices = @transform_0, window_bounds = array<i64: 128, 32>}, {pipeline_mode = #tpu.pipeline_mode<synchronous>, transform_indices = @transform_1, window_bounds = array<i64: 32, 192>}, {pipeline_mode = #tpu.pipeline_mode<synchronous>, transform_indices = @transform_2, window_bounds = array<i64: 1, 192>}, {pipeline_mode = #tpu.pipeline_mode<synchronous>, transform_indices = @transform_3, window_bounds = array<i64: 128, 128>}, {pipeline_mode = #tpu.pipeline_mode<synchronous>, transform_indices = @transform_4, window_bounds = array<i64: 1, 128>}, {pipeline_mode = #tpu.pipeline_mode<synchronous>, transform_indices = @transform_5, window_bounds = array<i64: 128, 64>}, {pipeline_mode = #tpu.pipeline_mode<synchronous>, transform_indices = @transform_6, window_bounds = array<i64: 1, 64>}, {transform_indices = @transform_7, window_bounds = array<i64: 128, 64>}]} {
    %c0 = arith.constant 0 : index
    %c0_0 = arith.constant 0 : index
    %0 = vector.load %arg1[%c0, %c0_0] : memref<128x32xbf16, #tpu.memory_space<vmem>>, vector<128x32xbf16>
    %c0_1 = arith.constant 0 : index
    %c0_2 = arith.constant 0 : index
    %1 = vector.load %arg2[%c0_1, %c0_2] : memref<32x192xbf16, #tpu.memory_space<vmem>>, vector<32x192xbf16>
    %cst = arith.constant dense<0.000000e+00> : vector<128x192xf32>
    %2 = tpu.matmul %0, %1, %cst {dimension_numbers = #tpu.dot_dimension_numbers<[1], [0], [0], [1], [0, 0, 1, 1], [], []>} : vector<128x32xbf16>, vector<32x192xbf16>, vector<128x192xf32> -> vector<128x192xf32>
    %c0_3 = arith.constant 0 : index
    %c0_4 = arith.constant 0 : index
    %3 = vector.load %arg3[%c0_3, %c0_4] : memref<1x192xf32, #tpu.memory_space<vmem>>, vector<1x192xf32>
    %4 = vector.broadcast %3 : vector<1x192xf32> to vector<128x192xf32>
    %5 = arith.addf %2, %4 : vector<128x192xf32>
    %6 = vector.extract_strided_slice %5 {offsets = [0, 0], sizes = [128, 128], strides = [1, 1]} : vector<128x192xf32> to vector<128x128xf32>
    %cst_5 = arith.constant 0.000000e+00 : f32
    %7 = vector.broadcast %cst_5 : f32 to vector<128x128xf32>
    %8 = arith.maximumf %6, %7 : vector<128x128xf32>
    %9 = vector.extract_strided_slice %5 {offsets = [0, 128], sizes = [128, 64], strides = [1, 1]} : vector<128x192xf32> to vector<128x64xf32>
    %10 = arith.truncf %8 : vector<128x128xf32> to vector<128x128xbf16>
    %c0_6 = arith.constant 0 : index
    %c0_7 = arith.constant 0 : index
    %11 = vector.load %arg4[%c0_6, %c0_7] : memref<128x128xbf16, #tpu.memory_space<vmem>>, vector<128x128xbf16>
    %cst_8 = arith.constant dense<0.000000e+00> : vector<128x128xf32>
    %12 = tpu.matmul %10, %11, %cst_8 {dimension_numbers = #tpu.dot_dimension_numbers<[1], [0], [0], [1], [0, 0, 1, 1], [], []>} : vector<128x128xbf16>, vector<128x128xbf16>, vector<128x128xf32> -> vector<128x128xf32>
    %c0_9 = arith.constant 0 : index
    %c0_10 = arith.constant 0 : index
    %13 = vector.load %arg5[%c0_9, %c0_10] : memref<1x128xf32, #tpu.memory_space<vmem>>, vector<1x128xf32>
    %14 = vector.broadcast %13 : vector<1x128xf32> to vector<128x128xf32>
    %15 = arith.addf %12, %14 : vector<128x128xf32>
    %cst_11 = arith.constant 0.000000e+00 : f32
    %16 = vector.broadcast %cst_11 : f32 to vector<128x128xf32>
    %17 = arith.maximumf %15, %16 : vector<128x128xf32>
    %18 = arith.truncf %17 : vector<128x128xf32> to vector<128x128xbf16>
    %c0_12 = arith.constant 0 : index
    %c0_13 = arith.constant 0 : index
    %19 = vector.load %arg6[%c0_12, %c0_13] : memref<128x64xbf16, #tpu.memory_space<vmem>>, vector<128x64xbf16>
    %cst_14 = arith.constant dense<0.000000e+00> : vector<128x64xf32>
    %20 = tpu.matmul %18, %19, %cst_14 {dimension_numbers = #tpu.dot_dimension_numbers<[1], [0], [0], [1], [0, 0, 1, 1], [], []>} : vector<128x128xbf16>, vector<128x64xbf16>, vector<128x64xf32> -> vector<128x64xf32>
    %c0_15 = arith.constant 0 : index
    %c0_16 = arith.constant 0 : index
    %21 = vector.load %arg7[%c0_15, %c0_16] : memref<1x64xf32, #tpu.memory_space<vmem>>, vector<1x64xf32>
    %22 = vector.broadcast %21 : vector<1x64xf32> to vector<128x64xf32>
    %23 = arith.addf %20, %22 : vector<128x64xf32>
    %cst_17 = arith.constant 0.000000e+00 : f32
    %24 = vector.broadcast %cst_17 : f32 to vector<128x64xf32>
    %25 = arith.maximumf %23, %24 : vector<128x64xf32>
    %26 = arith.addf %25, %9 : vector<128x64xf32>
    %c0_18 = arith.constant 0 : index
    %c0_19 = arith.constant 0 : index
    %27 = vector.load %arg8[%c0_18, %c0_19] : memref<128x64xf32, #tpu.memory_space<vmem>>, vector<128x64xf32>
    tpu.vector_store %arg8[%c0_18, %c0_19], %26 {strides = array<i32>} : memref<128x64xf32, #tpu.memory_space<vmem>>, vector<128x64xf32>,
    return
  }
  func.func @transform_0(%arg0: i32) -> (i32, i32) {
    %c0_i32 = arith.constant 0 : i32
    %c0_i32_0 = arith.constant 0 : i32
    return %arg0, %c0_i32 : i32, i32
  }
  func.func @transform_1(%arg0: i32) -> (i32, i32) {
    %c0_i32 = arith.constant 0 : i32
    %c0_i32_0 = arith.constant 0 : i32
    %c0_i32_1 = arith.constant 0 : i32
    return %c0_i32, %c0_i32_0 : i32, i32
  }
  func.func @transform_2(%arg0: i32) -> (i32, i32) {
    %c0_i32 = arith.constant 0 : i32
    %c0_i32_0 = arith.constant 0 : i32
    %c0_i32_1 = arith.constant 0 : i32
    return %c0_i32, %c0_i32_0 : i32, i32
  }
  func.func @transform_3(%arg0: i32) -> (i32, i32) {
    %c0_i32 = arith.constant 0 : i32
    %c0_i32_0 = arith.constant 0 : i32
    %c0_i32_1 = arith.constant 0 : i32
    return %c0_i32, %c0_i32_0 : i32, i32
  }
  func.func @transform_4(%arg0: i32) -> (i32, i32) {
    %c0_i32 = arith.constant 0 : i32
    %c0_i32_0 = arith.constant 0 : i32
    %c0_i32_1 = arith.constant 0 : i32
    return %c0_i32, %c0_i32_0 : i32, i32
  }
  func.func @transform_5(%arg0: i32) -> (i32, i32) {
    %c0_i32 = arith.constant 0 : i32
    %c0_i32_0 = arith.constant 0 : i32
    %c0_i32_1 = arith.constant 0 : i32
    return %c0_i32, %c0_i32_0 : i32, i32
  }
  func.func @transform_6(%arg0: i32) -> (i32, i32) {
    %c0_i32 = arith.constant 0 : i32
    %c0_i32_0 = arith.constant 0 : i32
    %c0_i32_1 = arith.constant 0 : i32
    return %c0_i32, %c0_i32_0 : i32, i32
  }
  func.func @transform_7(%arg0: i32) -> (i32, i32) {
    %c0_i32 = arith.constant 0 : i32
    %c0_i32_0 = arith.constant 0 : i32
    return %arg0, %c0_i32 : i32, i32
  }
}

</mosaic_0001>

<bundles_post_ra>
// kernel: fc_forward.1
= control target key start
LH: loop header
LB: loop body
LE: loop exit
PB: predicated region body
PF: predicated region fallthrough
CT: control target
= control target key end

     0   :  { %s1251_s24 = smov 0   ;;  %s1503_s0 = inlined_call_operand.vmem [shape: bf16[256,32], index: 0, kind: input, shape index: {}]   ;;  %s1504_s1 = inlined_call_operand.vmem [shape: bf16[32,192], index: 1, kind: input, shape index: {}]   ;;  %s1505_s2 = inlined_call_operand.vmem [shape: f32[1,192], index: 2, kind: input, shape index: {}]   ;;  %s1506_s3 = inlined_call_operand.vmem [shape: bf16[128,128], index: 3, kind: input, shape index: {}]   ;;  %s1507_s4 = inlined_call_operand.vmem [shape: f32[1,128], index: 4, kind: input, shape index: {}]   ;;  %s1508_s5 = inlined_call_operand.vmem [shape: bf16[128,64], index: 5, kind: input, shape index: {}]   ;;  %s1509_s6 = inlined_call_operand.vmem [shape: f32[1,64], index: 6, kind: input, shape index: {}]   ;;  %s1510_s7 = inlined_call_operand.vmem [shape: f32[256,64], index: 7, kind: output, shape index: {}]  }
   0x1 LB: > { %s1002_s25 = sadd.s32 4294967295, %s1208_s24   ;;  %p1006_p0 = scmp.ge.s32.totalorder %s1208_s24, 1  ;;  %s1208_s24 = sphi %s1251_s24, %s17_s24  }
   0x2   : > { %p238_p1 = scmp.lt.s32.totalorder %s1208_s24, 3 }
   0x4   : > { %p239_p2 = pnand %p1006_p0, %p238_p1 }
   0x5   : > { %s1007_s28 = sshll.u32 (!%p239_p2), %s1002_s25, 4 }
   0x6   : > { %242 = sbr.rel (%p239_p2) target bundleno = 691 (0x2b3), region = 48  ;;  %p271_p3 = scmp.lt.s32.totalorder (!%p239_p2), %s1007_s28, 31 }
   0xb   : > { %v1172_v0 = vld [vmem:[%s1504_s1 + $0x14] ss:$8 sps:$4 sm:$0xff]   ;;  %v1174_v1 = vld [vmem:[%s1504_s1 + $0x10] ss:$8 sps:$4 sm:$0xff]   ;;  %v1210_v2 = vmov 0   ;;  %s1512_s28 = smov (!%p271_p3, %s1007_s28), 31  ;;  %v305_v26 = vlaneseq }
   0xc   : > { %432 = vmatprep.mubr.bf16.mxu0 %v1210_v2  ;;  %412 = vmatprep.subr.bf16.mxu0 %v1172_v0  ;;  %v1175_v3 = vld [vmem:[%s1504_s1 + $0x4] ss:$8 sps:$4 sm:$0xff]   ;;  %v1177_v4 = vld [vmem:[%s1504_s1] ss:$8 sps:$4 sm:$0xff]   ;;  %v1186_v5 = vld [vmem:[%s1506_s3 + $0x38] sm:$0xff]   ;;  %s1008_s16 = sshll.u32 %s1512_s28, 2 }
   0xd   : > { %413 = vmatpush1.bf16.msra.mxu0 %v1174_v1  ;;  %v1187_v6 = vld [vmem:[%s1506_s3 + $0x30] sm:$0xff]   ;;  %1083 = vmatprep.subr.bf16.mxu1 %v1186_v5  ;;  %s1283_s19 = scalar_lea.vmem %s1503_s0, %s1008_s16  ;;  %v1188_v7 = vld [vmem:[%s1506_s3 + $0x28] sm:$0xff]   ;;  %vm375_vm0 = vcmask 261120   ;;  %v1189_v9 = vld [vmem:[%s1506_s3 + $0x20] sm:$0xff]   ;;  %v1334_v27 = vshrl.u32 %v305_v26, 7  ;;  %s1010_s12 = sshll.u32 %s1512_s28, 3 }
   0xe   : > { %414 = vmatprep.subr.bf16.mxu0 %v1175_v3  ;;  %1084 = vmatpush3.bf16.msra.mxu1 %v1186_v5  ;;  %v1178_v8 = vld [vmem:[%s1283_s19] sm:$0xff]   ;;  %v1179_v10 = vld [vmem:[%s1283_s19 + $0x8] sm:$0xff]   ;;  %v1180_v11 = vld [vmem:[%s1283_s19 + $0x10] sm:$0xff]   ;;  %s1422_s15 = scalar_lea.vmem %s1510_s7, %s1010_s12  ;;  %vm929_vm1 = vcmask 523264  }
   0xf   : > { %1085 = vmatprep.subr.bf16.mxu1 %v1187_v6  ;;  %v1181_v12 = vld [vmem:[%s1283_s19 + $0x18] sm:$0xff]   ;;  %v1182_v13 = vld [vmem:[%s1283_s19 + $0x20] sm:$0xff]   ;;  %v1183_v14 = vld [vmem:[%s1283_s19 + $0x28] sm:$0xff]   ;;  %v307_v28 = vsub.s32 0, %v1334_v27 }
  0x10   : > { %v1184_v15 = vld [vmem:[%s1283_s19 + $0x30] sm:$0xff]   ;;  %v1185_v16 = vld [vmem:[%s1283_s19 + $0x38] sm:$0xff]   ;;  %v1192_v19 = vld [vmem:[%s1506_s3 + $0x8] sm:$0xff]  }
  0x11   : > { %415 = vmatpush1.bf16.msra.mxu0 %v1177_v4  ;;  %v1190_v17 = vld [vmem:[%s1506_s3 + $0x18] sm:$0xff]   ;;  %v1191_v18 = vld [vmem:[%s1506_s3 + $0x10] sm:$0xff]   ;;  %v1193_v20 = vld [vmem:[%s1506_s3] sm:$0xff]  }
  0x12   : > { %1086 = vmatpush3.bf16.msra.mxu1 %v1187_v6  ;;  %v1194_v21 = vld [vmem:[%s1508_s5 + $0x38] sm:$0xff]   ;;  %v1195_v22 = vld [vmem:[%s1508_s5 + $0x30] sm:$0xff]   ;;  %v1196_v23 = vld [vmem:[%s1508_s5 + $0x28] sm:$0xff]  }
  0x13   : > { %1087 = vmatprep.subr.bf16.mxu1 %v1188_v7  ;;  %1115 = vmatprep.subr.bf16.mxu0 %v1194_v21  ;;  %v1197_v24 = vld [vmem:[%s1508_s5 + $0x20] sm:$0xff]   ;;  %v1198_v25 = vld [vmem:[%s1508_s5 + $0x18] sm:$0xff]  }
  0x14   : > { %1023 = vmatmul.mubr.msk.bf16.vlgmr.msra.gmra.mxu0 %vm375_vm0, %v1178_v8  ;;  %v1340_v29 = vld [vmem:[%s1505_s2] sm:$0x3] }
  0x15   : > { %442 = vmatprep.mubr.bf16.mxu0 %v1210_v2  ;;  %1116 = vmatpush3.bf16.msra.mxu0 %v1194_v21  ;;  %v1343_v30 = vrot.slane %v1340_v29, %v307_v28 }
  0x16   : > { %1088 = vmatpush3.bf16.msra.mxu1 %v1188_v7  ;;  %1117 = vmatprep.subr.bf16.mxu0 %v1195_v22 }
  0x17   : > { %1089 = vmatprep.subr.bf16.mxu1 %v1189_v9 }
  0x19   : > { %1118 = vmatpush3.bf16.msra.mxu0 %v1195_v22 }
  0x1a   : > { %1090 = vmatpush3.bf16.msra.mxu1 %v1189_v9  ;;  %1119 = vmatprep.subr.bf16.mxu0 %v1196_v23 }
  0x1b   : > { %1091 = vmatprep.subr.bf16.mxu1 %v1190_v17 }
  0x1c   : > { %1024 = vmatmul.mubr.msk.bf16.gmra.mxu0 %vm375_vm0, %v1179_v10 }
  0x1d   : > { %452 = vmatprep.mubr.bf16.mxu0 %v1210_v2  ;;  %1120 = vmatpush3.bf16.msra.mxu0 %v1196_v23 }
  0x1e   : > { %1092 = vmatpush3.bf16.msra.mxu1 %v1190_v17  ;;  %1121 = vmatprep.subr.bf16.mxu0 %v1197_v24 }
  0x1f   : > { %1093 = vmatprep.subr.bf16.mxu1 %v1191_v18 }
  0x21   : > { %1122 = vmatpush3.bf16.msra.mxu0 %v1197_v24 }
  0x22   : > { %1094 = vmatpush3.bf16.msra.mxu1 %v1191_v18  ;;  %1123 = vmatprep.subr.bf16.mxu0 %v1198_v25 }
  0x23   : > { %1095 = vmatprep.subr.bf16.mxu1 %v1192_v19 }
  0x24   : > { %1025 = vmatmul.mubr.msk.bf16.gmra.mxu0 %vm375_vm0, %v1180_v11 }
  0x25   : > { %462 = vmatprep.mubr.bf16.mxu0 %v1210_v2  ;;  %1124 = vmatpush3.bf16.msra.mxu0 %v1198_v25 }
  0x26   : > { %1096 = vmatpush3.bf16.msra.mxu1 %v1192_v19 }
  0x27   : > { %1097 = vmatprep.subr.bf16.mxu1 %v1193_v20 }
  0x2a   : > { %1098 = vmatpush3.bf16.msra.mxu1 %v1193_v20 }
  0x2b   : > { %1147 = vmatprep.subr.bf16.mxu1 %v1194_v21 }
  0x2c   : > { %1026 = vmatmul.mubr.msk.bf16.gmra.mxu0 %vm375_vm0, %v1181_v12 }
  0x2d   : > { %472 = vmatprep.mubr.bf16.mxu0 %v1210_v2 }
  0x34   : > { %1027 = vmatmul.mubr.msk.bf16.gmra.mxu0 %vm375_vm0, %v1182_v13 }
  0x35   : > { %482 = vmatprep.mubr.bf16.mxu0 %v1210_v2 }
  0x3c   : > { %1028 = vmatmul.mubr.msk.bf16.gmra.mxu0 %vm375_vm0, %v1183_v14 }
  0x3d   : > { %492 = vmatprep.mubr.bf16.mxu0 %v1210_v2 }
  0x44   : > { %1029 = vmatmul.mubr.msk.bf16.gmra.mxu0 %vm375_vm0, %v1184_v15 }
  0x45   : > { %502 = vmatprep.mubr.bf16.mxu0 %v1210_v2 }
  0x4c   : > { %1030 = vmatmul.mubr.msk.bf16.gmra.mxu0 %vm375_vm0, %v1185_v16 }
  0xd4   : > { %v434_v31 = vpop.f32.mrf.mxu0 }
  0xd5   : > { %v435_v33 = vadd.f32 %v434_v31, %v1343_v30 }
  0xd6   : > { %v1345_v32 = vpop.f32.mrf.mxu0 }
  0xd7   : > { %v513_v37 = vmax.f32 %v435_v33, 0.0 }
  0xd8   : > { %v438_v34 = vpop.f32.mrf.mxu0 }
  0xd9   : > { %v439_v35 = vadd.f32 %v438_v34, %v1343_v30 }
  0xda   : > { %v1349_v36 = vpop.f32.mrf.mxu0 }
  0xdb   : > { %v514_v38 = vmax.f32 %v439_v35, 0.0 }
  0xdc   : > { %v444_v39 = vpop.f32.mrf.mxu0 }
  0xdd   : > { %v529_v40 = vpack.c.bf16 %v514_v38, %v513_v37  ;;  %v445_v42 = vadd.f32 %v444_v39, %v1343_v30 }
  0xde   : > { %v1351_v41 = vpop.f32.mrf.mxu0 }
  0xdf   : > { %1099 = vmatprep.mubr.bf16.mxu1 %v529_v40  ;;  %v515_v46 = vmax.f32 %v445_v42, 0.0 }
  0xe0   : > { %v448_v43 = vpop.f32.mrf.mxu0 }
  0xe1   : > { %v449_v44 = vadd.f32 %v448_v43, %v1343_v30 }
  0xe2   : > { %v1355_v45 = vpop.f32.mrf.mxu0 }
  0xe3   : > { %v516_v47 = vmax.f32 %v449_v44, 0.0  ;;  %v1199_v44 = vld [vmem:[%s1508_s5 + $0x10] sm:$0xff]  }
  0xe4   : > { %v454_v48 = vpop.f32.mrf.mxu0  ;;  %1125 = vmatprep.subr.bf16.mxu0 %v1199_v44 }
  0xe5   : > { %v530_v49 = vpack.c.bf16 %v516_v47, %v515_v46  ;;  %v455_v51 = vadd.f32 %v454_v48, %v1343_v30  ;;  %1126 = vmatpush3.bf16.msra.mxu0 %v1199_v44  ;;  %v1200_v46 = vld [vmem:[%s1508_s5 + $0x8] sm:$0xff]  }
  0xe6   : > { %v1357_v50 = vpop.f32.mrf.mxu0  ;;  %1127 = vmatprep.subr.bf16.mxu0 %v1200_v46 }
  0xe7   : > { %1100 = vmatmul.mubr.bf16.vlgmr.msra.gmra.mxu1 %v530_v49  ;;  %v517_v55 = vmax.f32 %v455_v51, 0.0  ;;  %v1031_v49 = vld [vmem:[%s1507_s4] ss:$0 sm:$0xff] }
  0xe8   : > { %v458_v52 = vpop.f32.mrf.mxu0  ;;  %1155 = vmatpush3.bf16.msra.mxu1 %v1194_v21 }
  0xe9   : > { %v459_v53 = vadd.f32 %v458_v52, %v1343_v30  ;;  %1148 = vmatprep.subr.bf16.mxu1 %v1195_v22  ;;  %1128 = vmatpush3.bf16.msra.mxu0 %v1200_v46 }
  0xea   : > { %v1361_v54 = vpop.f32.mrf.mxu0 }
  0xeb   : > { %v518_v56 = vmax.f32 %v459_v53, 0.0 }
  0xec   : > { %v464_v57 = vpop.f32.mrf.mxu0  ;;  %1156 = vmatpush3.bf16.msra.mxu1 %v1195_v22 }
  0xed   : > { %v531_v58 = vpack.c.bf16 %v518_v56, %v517_v55  ;;  %1149 = vmatprep.subr.bf16.mxu1 %v1196_v23  ;;  %v465_v60 = vadd.f32 %v464_v57, %v1343_v30 }
  0xee   : > { %v1363_v59 = vpop.f32.mrf.mxu0 }
  0xef   : > { %1103 = vmatprep.mubr.bf16.mxu1 %v531_v58  ;;  %v519_v0 = vmax.f32 %v465_v60, 0.0 }
  0xf0   : > { %v468_v61 = vpop.f32.mrf.mxu0  ;;  %1157 = vmatpush3.bf16.msra.mxu1 %v1196_v23 }
  0xf1   : > { %v469_v62 = vadd.f32 %v468_v61, %v1343_v30  ;;  %1150 = vmatprep.subr.bf16.mxu1 %v1197_v24 }
  0xf2   : > { %v1367_v63 = vpop.f32.mrf.mxu0 }
  0xf3   : > { %v520_v1 = vmax.f32 %v469_v62, 0.0 }
  0xf4   : > { %v474_v2 = vpop.f32.mrf.mxu0  ;;  %1158 = vmatpush3.bf16.msra.mxu1 %v1197_v24 }
  0xf5   : > { %v532_v3 = vpack.c.bf16 %v520_v1, %v519_v0  ;;  %1151 = vmatprep.subr.bf16.mxu1 %v1198_v25  ;;  %v475_v5 = vadd.f32 %v474_v2, %v1343_v30 }
  0xf6   : > { %v1369_v4 = vpop.f32.mrf.mxu0 }
  0xf7   : > { %1104 = vmatmul.mubr.bf16.gmra.mxu1 %v532_v3  ;;  %v521_v9 = vmax.f32 %v475_v5, 0.0 }
  0xf8   : > { %v478_v6 = vpop.f32.mrf.mxu0  ;;  %1159 = vmatpush3.bf16.msra.mxu1 %v1198_v25 }
  0xf9   : > { %v479_v7 = vadd.f32 %v478_v6, %v1343_v30  ;;  %1152 = vmatprep.subr.bf16.mxu1 %v1199_v44 }
  0xfa   : > { %v1373_v8 = vpop.f32.mrf.mxu0 }
  0xfb   : > { %v522_v10 = vmax.f32 %v479_v7, 0.0 }
  0xfc   : > { %v484_v11 = vpop.f32.mrf.mxu0  ;;  %1160 = vmatpush3.bf16.msra.mxu1 %v1199_v44 }
  0xfd   : > { %v533_v12 = vpack.c.bf16 %v522_v10, %v521_v9  ;;  %v485_v14 = vadd.f32 %v484_v11, %v1343_v30  ;;  %1153 = vmatprep.subr.bf16.mxu1 %v1200_v46 }
  0xfe   : > { %v1375_v13 = vpop.f32.mrf.mxu0 }
  0xff   : > { %1107 = vmatprep.mubr.bf16.mxu1 %v533_v12  ;;  %v523_v18 = vmax.f32 %v485_v14, 0.0 }
 0x100   : > { %v488_v15 = vpop.f32.mrf.mxu0  ;;  %1161 = vmatpush3.bf16.msra.mxu1 %v1200_v46 }
 0x101   : > { %v489_v16 = vadd.f32 %v488_v15, %v1343_v30 }
 0x102   : > { %v1379_v17 = vpop.f32.mrf.mxu0 }
 0x103   : > { %v524_v19 = vmax.f32 %v489_v16, 0.0 }
 0x104   : > { %v494_v20 = vpop.f32.mrf.mxu0 }
 0x105   : > { %v534_v21 = vpack.c.bf16 %v524_v19, %v523_v18  ;;  %v495_v23 = vadd.f32 %v494_v20, %v1343_v30 }
 0x106   : > { %v1381_v22 = vpop.f32.mrf.mxu0 }
 0x107   : > { %1108 = vmatmul.mubr.bf16.gmra.mxu1 %v534_v21  ;;  %v525_v28 = vmax.f32 %v495_v23, 0.0 }
 0x108   : > { %v498_v24 = vpop.f32.mrf.mxu0 }
 0x109   : > { %v499_v25 = vadd.f32 %v498_v24, %v1343_v30 }
 0x10a   : > { %v1385_v26 = vpop.f32.mrf.mxu0 }
 0x10b   : > { %v526_v31 = vmax.f32 %v499_v25, 0.0 }
 0x10c   : > { %v504_v33 = vpop.f32.mrf.mxu0 }
 0x10d   : > { %v535_v34 = vpack.c.bf16 %v526_v31, %v525_v28  ;;  %v505_v37 = vadd.f32 %v504_v33, %v1343_v30 }
 0x10e   : > { %v1387_v35 = vpop.f32.mrf.mxu0 }
 0x10f   : > { %1111 = vmatprep.mubr.bf16.mxu1 %v535_v34  ;;  %v527_v40 = vmax.f32 %v505_v37, 0.0 }
 0x110   : > { %v508_v38 = vpop.f32.mrf.mxu0 }
 0x111   : > { %v509_v39 = vadd.f32 %v508_v38, %v1343_v30  ;;  %v1201_v30 = vld [vmem:[%s1508_s5] sm:$0xff]  }
 0x112   : > { %1129 = vmatprep.subr.bf16.mxu0 %v1201_v30  ;;  %1154 = vmatprep.subr.bf16.mxu1 %v1201_v30 }
 0x113   : > { %v528_v42 = vmax.f32 %v509_v39, 0.0  ;;  %1130 = vmatpush3.bf16.msra.mxu0 %v1201_v30  ;;  %1162 = vmatpush3.bf16.msra.mxu1 %v1201_v30 }
 0x115   : > { %v536_v43 = vpack.c.bf16 %v528_v42, %v527_v40 }
 0x117   : > { %1112 = vmatmul.mubr.bf16.gmra.mxu1 %v536_v43 }
 0x1a7   : > { %v1101_v47 = vpop.f32.mrf.mxu1 }
 0x1a8   : > { %v651_v55 = vadd.f32 %v1101_v47, %v1031_v49 }
 0x1a9   : > { %v642_v48 = vpop.f32.mrf.mxu1 }
 0x1aa   : > { %v643_v52 = vadd.f32 %v1031_v49, %v642_v48  ;;  %v707_v62 = vmax.f32 %v651_v55, 0.0 }
 0x1ab   : > { %v1102_v51 = vpop.f32.mrf.mxu1 }
 0x1ac   : > { %v654_v53 = vadd.f32 %v1102_v51, %v1031_v49  ;;  %v705_v60 = vmax.f32 %v643_v52, 0.0 }
 0x1ad   : > { %v645_v56 = vpop.f32.mrf.mxu1 }
 0x1ae   : > { %v646_v57 = vadd.f32 %v1031_v49, %v645_v56  ;;  %v708_v58 = vmax.f32 %v654_v53, 0.0 }
 0x1b0   : > { %v706_v61 = vmax.f32 %v646_v57, 0.0  ;;  %v722_v1 = vpack.c.bf16 %v708_v58, %v707_v62  ;;  %v1404_v62 = vpop.f32.mrf.mxu0 }
 0x1b2   : > { %v721_v0 = vpack.c.bf16 %v706_v61, %v705_v60  ;;  %v311_v61 = vsub.s32 1, %v1334_v27 }
 0x1b4   : > { %1131 = vmatprep.mubr.bf16.mxu0 %v721_v0  ;;  %v1409_v0 = vld [vmem:[%s1509_s6] ss:$0 sm:$0xff] }
 0x1b5   : > { %1132 = vmatmul.mubr.bf16.vlgmr.msra.gmra.mxu0 %v722_v1 }
 0x1b7   : > { %v1105_v2 = vpop.f32.mrf.mxu1 }
 0x1b8   : > { %v667_v9 = vadd.f32 %v1105_v2, %v1031_v49 }
 0x1b9   : > { %v658_v3 = vpop.f32.mrf.mxu1 }
 0x1ba   : > { %v659_v6 = vadd.f32 %v1031_v49, %v658_v3  ;;  %v711_v16 = vmax.f32 %v667_v9, 0.0 }
 0x1bb   : > { %v1106_v5 = vpop.f32.mrf.mxu1 }
 0x1bc   : > { %v670_v7 = vadd.f32 %v1106_v5, %v1031_v49  ;;  %v709_v14 = vmax.f32 %v659_v6, 0.0 }
 0x1bd   : > { %v661_v10 = vpop.f32.mrf.mxu1 }
 0x1be   : > { %v662_v11 = vadd.f32 %v1031_v49, %v661_v10  ;;  %v712_v12 = vmax.f32 %v670_v7, 0.0 }
 0x1c0   : > { %v710_v15 = vmax.f32 %v662_v11, 0.0  ;;  %v724_v19 = vpack.c.bf16 %v712_v12, %v711_v16 }
 0x1c2   : > { %v723_v18 = vpack.c.bf16 %v710_v15, %v709_v14 }
 0x1c4   : > { %1135 = vmatprep.mubr.bf16.mxu1 %v723_v18 }
 0x1c5   : > { %1136 = vmatmul.mubr.bf16.vlgmr.msra.gmra.mxu1 %v724_v19 }
 0x1c7   : > { %v1109_v20 = vpop.f32.mrf.mxu1 }
 0x1c8   : > { %v683_v28 = vadd.f32 %v1109_v20, %v1031_v49 }
 0x1c9   : > { %v674_v21 = vpop.f32.mrf.mxu1 }
 0x1ca   : > { %v675_v24 = vadd.f32 %v1031_v49, %v674_v21  ;;  %v715_v39 = vmax.f32 %v683_v28, 0.0 }
 0x1cb   : > { %v1110_v23 = vpop.f32.mrf.mxu1 }
 0x1cc   : > { %v686_v25 = vadd.f32 %v1110_v23, %v1031_v49  ;;  %v713_v37 = vmax.f32 %v675_v24, 0.0 }
 0x1cd   : > { %v677_v31 = vpop.f32.mrf.mxu1 }
 0x1ce   : > { %v678_v33 = vadd.f32 %v1031_v49, %v677_v31  ;;  %v716_v34 = vmax.f32 %v686_v25, 0.0 }
 0x1d0   : > { %v714_v38 = vmax.f32 %v678_v33, 0.0  ;;  %v726_v42 = vpack.c.bf16 %v716_v34, %v715_v39 }
 0x1d2   : > { %v725_v40 = vpack.c.bf16 %v714_v38, %v713_v37 }
 0x1d4   : > { %1139 = vmatprep.mubr.bf16.mxu1 %v725_v40 }
 0x1d5   : > { %1140 = vmatmul.mubr.bf16.gmra.mxu1 %v726_v42 }
 0x1d7   : > { %v1113_v43 = vpop.f32.mrf.mxu1 }
 0x1d8   : > { %v699_v48 = vadd.f32 %v1113_v43, %v1031_v49 }
 0x1d9   : > { %v690_v44 = vpop.f32.mrf.mxu1 }
 0x1da   : > { %v691_v30 = vadd.f32 %v1031_v49, %v690_v44  ;;  %v719_v57 = vmax.f32 %v699_v48, 0.0 }
 0x1db   : > { %v1114_v46 = vpop.f32.mrf.mxu1 }
 0x1dc   : > { %v702_v47 = vadd.f32 %v1114_v46, %v1031_v49  ;;  %v717_v55 = vmax.f32 %v691_v30, 0.0 }
 0x1dd   : > { %v693_v51 = vpop.f32.mrf.mxu1 }
 0x1de   : > { %v694_v52 = vadd.f32 %v1031_v49, %v693_v51  ;;  %v720_v53 = vmax.f32 %v702_v47, 0.0  ;;  %v1412_v49 = vrot.slane %v1340_v29, %v311_v61 }
 0x1e0   : > { %v718_v56 = vmax.f32 %v694_v52, 0.0  ;;  %v728_v60 = vpack.c.bf16 %v720_v53, %v719_v57  ;;  %v447_v5 = vadd.f32 %v1351_v41, %v1412_v49  ;;  %v437_v7 = vadd.f32 %v1345_v32, %v1412_v49 }
 0x1e1   : > { %v451_v12 = vadd.f32 %v1355_v45, %v1412_v49  ;;  %v441_v18 = vadd.f32 %v1349_v36, %v1412_v49  ;;  %v467_v24 = vadd.f32 %v1363_v59, %v1412_v49  ;;  %v457_v31 = vadd.f32 %v1357_v50, %v1412_v49 }
 0x1e2   : > { %v727_v58 = vpack.c.bf16 %v718_v56, %v717_v55  ;;  %v471_v39 = vadd.f32 %v1367_v63, %v1412_v49  ;;  %v461_v43 = vadd.f32 %v1361_v54, %v1412_v49  ;;  %v487_v48 = vadd.f32 %v1375_v13, %v1412_v49 }
 0x1e3   : > { %v477_v53 = vadd.f32 %v1369_v4, %v1412_v49 }
 0x1e4   : > { %1143 = vmatprep.mubr.bf16.mxu1 %v727_v58 }
 0x1e5   : > { %1144 = vmatmul.mubr.bf16.gmra.mxu1 %v728_v60  ;;  %v491_v60 = vadd.f32 %v1379_v17, %v1412_v49 }
 0x275   : > { %v1133_v1 = vpop.f32.mrf.mxu0 }
 0x276   : > { %v843_v2 = vadd.f32 %v1133_v1, %v1409_v0 }
 0x277   : > { %v834_v3 = vpop.f32.mrf.mxu0 }
 0x278   : > { %v899_v6 = vmax.f32 %v843_v2, 0.0  ;;  %v835_v27 = vadd.f32 %v1409_v0, %v834_v3  ;;  %v481_v2 = vadd.f32 %v1373_v8, %v1412_v49 }
 0x279   : > { %v1134_v29 = vpop.f32.mrf.mxu0 }
 0x27a   : > { %v915_v9 = vadd.f32 %v899_v6, %v447_v5  ;;  %v897_v10 = vmax.f32 %v835_v27, 0.0  ;;  %v846_v41 = vadd.f32 %v1134_v29, %v1409_v0  ;;  %v507_v29 = vadd.f32 %v1387_v35, %v1412_v49 }
 0x27b   : > { %v837_v11 = vpop.f32.mrf.mxu0 }
 0x27c   : > { %932 = vst.msk [vmem:[%s1422_s15 + $0x10] sm:$0xff] %vm929_vm1, %v915_v9  ;;  %v913_v14 = vadd.f32 %v897_v10, %v437_v7  ;;  %v900_v15 = vmax.f32 %v846_v41, 0.0  ;;  %v838_v16 = vadd.f32 %v1409_v0, %v837_v11  ;;  %v497_v10 = vadd.f32 %v1381_v22, %v1412_v49 }
 0x27e   : > { %930 = vst.msk [vmem:[%s1422_s15] sm:$0xff] %vm929_vm1, %v913_v14  ;;  %v916_v32 = vadd.f32 %v900_v15, %v451_v12  ;;  %v898_v19 = vmax.f32 %v838_v16, 0.0  ;;  %v511_v15 = vadd.f32 %v1404_v62, %v1412_v49 }
 0x280   : > { %933 = vst.msk [vmem:[%s1422_s15 + $0x18] sm:$0xff] %vm929_vm1, %v916_v32  ;;  %v914_v20 = vadd.f32 %v898_v19, %v441_v18  ;;  %v501_v32 = vadd.f32 %v1385_v26, %v1412_v49 }
 0x282   : > { %931 = vst.msk [vmem:[%s1422_s15 + $0x8] sm:$0xff] %vm929_vm1, %v914_v20 }
 0x285   : > { %v1137_v45 = vpop.f32.mrf.mxu1 }
 0x286   : > { %v859_v21 = vadd.f32 %v1137_v45, %v1409_v0 }
 0x287   : > { %v850_v23 = vpop.f32.mrf.mxu1 }
 0x288   : > { %v903_v25 = vmax.f32 %v859_v21, 0.0  ;;  %v851_v36 = vadd.f32 %v1409_v0, %v850_v23 }
 0x289   : > { %v1138_v28 = vpop.f32.mrf.mxu1 }
 0x28a   : > { %v919_v33 = vadd.f32 %v903_v25, %v467_v24  ;;  %v901_v34 = vmax.f32 %v851_v36, 0.0  ;;  %v862_v37 = vadd.f32 %v1138_v28, %v1409_v0 }
 0x28b   : > { %v853_v38 = vpop.f32.mrf.mxu1 }
 0x28c   : > { %936 = vst.msk [vmem:[%s1422_s15 + $0x30] sm:$0xff] %vm929_vm1, %v919_v33  ;;  %v917_v59 = vadd.f32 %v901_v34, %v457_v31  ;;  %v904_v40 = vmax.f32 %v862_v37, 0.0  ;;  %v854_v42 = vadd.f32 %v1409_v0, %v853_v38 }
 0x28e   : > { %934 = vst.msk [vmem:[%s1422_s15 + $0x20] sm:$0xff] %vm929_vm1, %v917_v59  ;;  %v920_v50 = vadd.f32 %v904_v40, %v471_v39  ;;  %v902_v44 = vmax.f32 %v854_v42, 0.0 }
 0x290   : > { %937 = vst.msk [vmem:[%s1422_s15 + $0x38] sm:$0xff] %vm929_vm1, %v920_v50  ;;  %v918_v46 = vadd.f32 %v902_v44, %v461_v43 }
 0x292   : > { %935 = vst.msk [vmem:[%s1422_s15 + $0x28] sm:$0xff] %vm929_vm1, %v918_v46 }
 0x295   : > { %v1141_v63 = vpop.f32.mrf.mxu1 }
 0x296   : > { %v875_v30 = vadd.f32 %v1141_v63, %v1409_v0 }
 0x297   : > { %v866_v47 = vpop.f32.mrf.mxu1 }
 0x298   : > { %v907_v51 = vmax.f32 %v875_v30, 0.0  ;;  %v867_v54 = vadd.f32 %v1409_v0, %v866_v47 }
 0x299   : > { %v1142_v52 = vpop.f32.mrf.mxu1 }
 0x29a   : > { %v923_v55 = vadd.f32 %v907_v51, %v487_v48  ;;  %v905_v56 = vmax.f32 %v867_v54, 0.0  ;;  %v878_v57 = vadd.f32 %v1142_v52, %v1409_v0 }
 0x29b   : > { %v869_v58 = vpop.f32.mrf.mxu1 }
 0x29c   : > { %940 = vst.msk [vmem:[%s1422_s15 + $0x50] sm:$0xff] %vm929_vm1, %v923_v55  ;;  %v921_v13 = vadd.f32 %v905_v56, %v477_v53  ;;  %v908_v61 = vmax.f32 %v878_v57, 0.0  ;;  %v870_v1 = vadd.f32 %v1409_v0, %v869_v58 }
 0x29e   : > { %938 = vst.msk [vmem:[%s1422_s15 + $0x40] sm:$0xff] %vm929_vm1, %v921_v13  ;;  %v924_v4 = vadd.f32 %v908_v61, %v491_v60  ;;  %v906_v3 = vmax.f32 %v870_v1, 0.0 }
 0x2a0   : > { %941 = vst.msk [vmem:[%s1422_s15 + $0x58] sm:$0xff] %vm929_vm1, %v924_v4  ;;  %v922_v5 = vadd.f32 %v906_v3, %v481_v2 }
 0x2a2   : > { %939 = vst.msk [vmem:[%s1422_s15 + $0x48] sm:$0xff] %vm929_vm1, %v922_v5 }
 0x2a5   : > { %v1145_v17 = vpop.f32.mrf.mxu1 }
 0x2a6   : > { %v891_v6 = vadd.f32 %v1145_v17, %v1409_v0 }
 0x2a7   : > { %v882_v27 = vpop.f32.mrf.mxu1 }
 0x2a8   : > { %v911_v7 = vmax.f32 %v891_v6, 0.0  ;;  %v883_v8 = vadd.f32 %v1409_v0, %v882_v27 }
 0x2a9   : > { %v1146_v9 = vpop.f32.mrf.mxu1 }
 0x2aa   : > { %v927_v41 = vadd.f32 %v911_v7, %v507_v29  ;;  %v909_v11 = vmax.f32 %v883_v8, 0.0  ;;  %v894_v12 = vadd.f32 %v1146_v9, %v1409_v0 }
 0x2ab   : > { %v885_v14 = vpop.f32.mrf.mxu1 }
 0x2ac   : > { %944 = vst.msk [vmem:[%s1422_s15 + $0x70] sm:$0xff] %vm929_vm1, %v927_v41  ;;  %v925_v35 = vadd.f32 %v909_v11, %v497_v10  ;;  %v912_v16 = vmax.f32 %v894_v12, 0.0  ;;  %v886_v18 = vadd.f32 %v1409_v0, %v885_v14 }
 0x2ae   : > { %942 = vst.msk [vmem:[%s1422_s15 + $0x60] sm:$0xff] %vm929_vm1, %v925_v35  ;;  %v928_v22 = vadd.f32 %v912_v16, %v511_v15  ;;  %v910_v19 = vmax.f32 %v886_v18, 0.0 }
 0x2b0   : > { %945 = vst.msk [vmem:[%s1422_s15 + $0x78] sm:$0xff] %vm929_vm1, %v928_v22  ;;  %v926_v20 = vadd.f32 %v910_v19, %v501_v32 }
 0x2b2   : > { %943 = vst.msk [vmem:[%s1422_s15 + $0x68] sm:$0xff] %vm929_vm1, %v926_v20 }
 0x2b3 PF: > { %s17_s24 = sadd.s32 1, %s1208_s24  }
 0x2b4   : > { %p14_p4 = scmp.ge.s32.totalorder %s17_s24, 4  }
 0x2b6   :  { %16 = sbr.rel (!%p14_p4) target bundleno = 1 (0x1), region = 78 }

</bundles_post_ra>
